<compile_context>
chip_gen: v7x
topology: tpu7x:2x2x1
jax: 0.10.0
libtpu: 0.0.40
codegen_flags: <defaults>
</compile_context>

<pallas_src>
import functools

import jax
import jax.numpy as jnp
from jax.experimental import pallas as pl
from jax.experimental.pallas import tpu as pltpu


def _self_attention_kernel(x_ref, w_ref, m_ref, o_ref, *, W):
    # x_ref : (Bblk, Cin, H*W)        lane-dense NCHW-flat input block
    # w_ref : (2*Cout_pad, 9*Cin)     fused, row-padded [conv ; attention] im2col weights
    # m_ref : (9, H*W)                per-tap border-validity masks (1.0 / 0.0)
    # o_ref : (Bblk, Cout, H*W)       lane-dense output block
    Bblk, Cin, HW = x_ref.shape
    Cout = o_ref.shape[1]
    half = w_ref.shape[0] // 2        # = Cout padded up to the 8-row sublane pack

    x = x_ref[...]                    # (Bblk, Cin, HW): single full-tile load
    masks = m_ref[...]                # (9, HW)

    # Build the im2col operand entirely in registers.  Tap (dy, dx) of image b is
    # a lane rotation (XLU) of the flattened image times the precomputed border
    # mask that realizes the conv's zero padding.  Center tap needs neither.
    cols = []
    for b in range(Bblk):
        xb = x[b]                                             # (Cin, HW)
        taps = []
        for dy in range(3):
            for dx in range(3):
                k = dy * 3 + dx
                shift = (dy - 1) * W + (dx - 1)               # flat pixel offset of this tap
                roll_amt = (-shift) % HW                      # tap[p] = x[(p + shift) % HW]
                tap = xb if roll_amt == 0 else pltpu.roll(xb, roll_amt, axis=1)
                if k != 4:                                    # center tap: mask is all ones
                    tap = tap * masks[k:k + 1, :]
                taps.append(tap)
        cols.append(jnp.concatenate(taps, axis=0))            # (9*Cin, HW)
    operand = cols[0] if Bblk == 1 else jnp.concatenate(cols, axis=1)  # (9*Cin, Bblk*HW)
    operand = operand.astype(w_ref.dtype)                     # bf16 MXU path if requested

    # One MXU pass per grid step: (2*Cout_pad, 9*Cin) @ (9*Cin, Bblk*HW) -> f32 acc.
    acc = jnp.dot(w_ref[...], operand, preferred_element_type=jnp.float32)

    feat = acc[:Cout, :]
    gate = jax.nn.sigmoid(acc[half:half + Cout, :])           # sublane-aligned start
    y = (feat * gate).astype(o_ref.dtype)                     # (Cout, Bblk*HW)

    # Per-image stores; column offsets b*HW are multiples of 128 -> aligned lane slices.
    for b in range(Bblk):
        o_ref[b] = y[:, b * HW:(b + 1) * HW]


def _pick_batch_block(B, max_block=8):
    """Largest divisor of B (<= max_block) that still leaves >= 2 parallel grid steps."""
    if B <= 1:
        return 1
    best = 1
    for cand in range(2, min(B, max_block) + 1):
        if B % cand == 0 and B // cand >= 2:
            best = cand
    return best


def self_attention_pallas(x_nchw, w_conv, w_att, *, compute_dtype=None, batch_block=None):
    """x_nchw: (B, Cin, H, W); w_*: (Cout, Cin, 3, 3) PyTorch-style weights.

    compute_dtype: dtype of the MXU matmul operands (weights + im2col operand);
    accumulation is always f32.  Tap construction runs in x's dtype.
    """
    B, Cin, H, W = x_nchw.shape
    Cout = w_conv.shape[0]
    HW = H * W
    mxu_dtype = jnp.dtype(compute_dtype) if compute_dtype is not None else x_nchw.dtype

    Bblk = batch_block if batch_block is not None else _pick_batch_block(B)
    assert B % Bblk == 0, (B, Bblk)

    # Free (contiguity-preserving) reshape: NCHW -> (B, Cin, H*W).  No transpose, no pad.
    x_flat = x_nchw.reshape(B, Cin, HW)

    # (Cout, Cin, kh, kw) -> (Cout, 9*Cin) with column index (dy*3+dx)*Cin + cin,
    # pad rows to the 8-row f32 sublane pack, then fuse both convs along rows.
    def to_mat(w):
        return jnp.transpose(w, (0, 2, 3, 1)).reshape(Cout, 9 * Cin)

    cout_pad = -(-Cout // 8) * 8
    wc, wa = to_mat(w_conv), to_mat(w_att)
    if cout_pad != Cout:
        zpad = jnp.zeros((cout_pad - Cout, 9 * Cin), wc.dtype)
        wc = jnp.concatenate([wc, zpad], axis=0)
        wa = jnp.concatenate([wa, zpad], axis=0)
    w_fused = jnp.concatenate([wc, wa], axis=0).astype(mxu_dtype)      # (2*cout_pad, 9*Cin)

    # Per-tap validity masks (the conv's zero padding), computed once in plain JAX.
    # NOTE: these depend on (H, W) and must be rebuilt for other spatial shapes.
    p = jnp.arange(HW, dtype=jnp.int32)
    hh, ww = p // W, p % W
    masks = []
    for dy in range(3):
        for dx in range(3):
            ok = ((hh + dy - 1 >= 0) & (hh + dy - 1 < H) &
                  (ww + dx - 1 >= 0) & (ww + dx - 1 < W))
            masks.append(ok)
    mask_arr = jnp.stack(masks, axis=0).astype(x_nchw.dtype)           # (9, HW)

    kernel = functools.partial(_self_attention_kernel, W=W)

    out_flat = pl.pallas_call(
        kernel,
        out_shape=jax.ShapeDtypeStruct((B, Cout, HW), x_nchw.dtype),
        grid_spec=pltpu.PrefetchScalarGridSpec(
            num_scalar_prefetch=0,
            grid=(B // Bblk,),
            in_specs=[
                pl.BlockSpec((Bblk, Cin, HW), lambda i: (i, 0, 0)),
                pl.BlockSpec((2 * cout_pad, 9 * Cin), lambda i: (0, 0)),
                pl.BlockSpec((9, HW), lambda i: (0, 0)),
            ],
            out_specs=pl.BlockSpec((Bblk, Cout, HW), lambda i: (i, 0, 0)),
        ),
        compiler_params=pltpu.CompilerParams(
            dimension_semantics=("parallel",)),
    )(x_flat, w_fused, mask_arr)

    # Free reshape back: (B, Cout, H*W) is already NCHW order.
    return out_flat.reshape(B, Cout, H, W)


def _reference(x_nchw, w_conv, w_att):
    """Pure-JAX reference (NCHW conv, padding=1, no bias)."""
    dn = ('NCHW', 'OIHW', 'NCHW')
    feat = jax.lax.conv_general_dilated(
        x_nchw, w_conv, window_strides=(1, 1), padding=((1, 1), (1, 1)),
        dimension_numbers=dn)
    att = jax.lax.conv_general_dilated(
        x_nchw, w_att, window_strides=(1, 1), padding=((1, 1), (1, 1)),
        dimension_numbers=dn)
    return feat * jax.nn.sigmoid(att)


if __name__ == "__main__":
    key = jax.random.PRNGKey(0)
    k_x, k_w, k_a = jax.random.split(key, 3)

    B, Cin, Cout, H, W = 2, 4, 8, 16, 16

    x = jax.random.normal(k_x, (B, Cin, H, W), dtype=jnp.float32)
    w_conv = jax.random.normal(k_w, (Cout, Cin, 3, 3), dtype=jnp.float32) * 0.1
    # Module __init__ zero-inits the attention conv; also test a non-trivial gate.
    w_att_zero = jnp.zeros((Cout, Cin, 3, 3), dtype=jnp.float32)
    w_att_rand = jax.random.normal(k_a, (Cout, Cin, 3, 3), dtype=jnp.float32) * 0.1

    # f32 path, Bblk = 1 (grid of 2 parallel steps).
    for w_att in (w_att_zero, w_att_rand):
        out = jax.block_until_ready(self_attention_pallas(x, w_conv, w_att))
        ref = _reference(x, w_conv, w_att)
        assert out.shape == ref.shape == (B, Cout, H, W)
        err = float(jnp.max(jnp.abs(out - ref)))
        assert jnp.allclose(out, ref, atol=1e-4, rtol=1e-4), err

    # Batched grid step path (B=4 -> Bblk=2, single wide dot per step).
    x4 = jnp.concatenate([x, x * 0.5], axis=0)
    out4 = jax.block_until_ready(self_attention_pallas(x4, w_conv, w_att_rand))
    ref4 = _reference(x4, w_conv, w_att_rand)
    err4 = float(jnp.max(jnp.abs(out4 - ref4)))
    assert jnp.allclose(out4, ref4, atol=1e-4, rtol=1e-4), err4

    # bf16-MXU path (operands quantized, f32 accumulation) with a looser tolerance.
    out_bf = jax.block_until_ready(
        self_attention_pallas(x, w_conv, w_att_rand, compute_dtype=jnp.bfloat16))
    ref_bf = _reference(x, w_conv, w_att_rand)
    err_bf = float(jnp.max(jnp.abs(out_bf - ref_bf)))
    assert jnp.allclose(out_bf, ref_bf, atol=5e-2, rtol=5e-2), err_bf

    print("KERNEL_OK")
</pallas_src>

<mosaic_0001>
module attributes {stable_mosaic.version = 11 : i64} {
  func.func @_self_attention_kernel(%arg0: i32, %arg1: memref<1x4x256xf32, #tpu.memory_space<vmem>>, %arg2: memref<16x36xf32, #tpu.memory_space<vmem>>, %arg3: memref<9x256xf32, #tpu.memory_space<vmem>>, %arg4: memref<1x8x256xf32, #tpu.memory_space<vmem>>) attributes {dimension_semantics = [#tpu.dimension_semantics<parallel>], iteration_bounds = array<i64: 2>, scalar_prefetch = 0 : i64, scratch_operands = 0 : i64, tpu.core_type = #tpu.core_type<tc>, window_params = [{transform_indices = @transform_0, window_bounds = array<i64: 1, 4, 256>}, {pipeline_mode = #tpu.pipeline_mode<synchronous>, transform_indices = @transform_1, window_bounds = array<i64: 16, 36>}, {pipeline_mode = #tpu.pipeline_mode<synchronous>, transform_indices = @transform_2, window_bounds = array<i64: 9, 256>}, {transform_indices = @transform_3, window_bounds = array<i64: 1, 8, 256>}]} {
    %c0 = arith.constant 0 : index
    %c0_0 = arith.constant 0 : index
    %c0_1 = arith.constant 0 : index
    %0 = vector.load %arg1[%c0, %c0_0, %c0_1] : memref<1x4x256xf32, #tpu.memory_space<vmem>>, vector<1x4x256xf32>
    %c0_2 = arith.constant 0 : index
    %c0_3 = arith.constant 0 : index
    %1 = vector.load %arg3[%c0_2, %c0_3] : memref<9x256xf32, #tpu.memory_space<vmem>>, vector<9x256xf32>
    %2 = vector.shape_cast %0 : vector<1x4x256xf32> to vector<4x256xf32>
    %c17_i32 = arith.constant 17 : i32
    %3 = tpu.dynamic_rotate %2 by %c17_i32 dim 1 : vector<4x256xf32>, i32 -> vector<4x256xf32>
    %4 = vector.extract_strided_slice %1 {offsets = [0, 0], sizes = [1, 256], strides = [1, 1]} : vector<9x256xf32> to vector<1x256xf32>
    %5 = vector.broadcast %4 : vector<1x256xf32> to vector<4x256xf32>
    %6 = arith.mulf %3, %5 : vector<4x256xf32>
    %c16_i32 = arith.constant 16 : i32
    %7 = tpu.dynamic_rotate %2 by %c16_i32 dim 1 : vector<4x256xf32>, i32 -> vector<4x256xf32>
    %8 = vector.extract_strided_slice %1 {offsets = [1, 0], sizes = [1, 256], strides = [1, 1]} : vector<9x256xf32> to vector<1x256xf32>
    %9 = vector.broadcast %8 : vector<1x256xf32> to vector<4x256xf32>
    %10 = arith.mulf %7, %9 : vector<4x256xf32>
    %c15_i32 = arith.constant 15 : i32
    %11 = tpu.dynamic_rotate %2 by %c15_i32 dim 1 : vector<4x256xf32>, i32 -> vector<4x256xf32>
    %12 = vector.extract_strided_slice %1 {offsets = [2, 0], sizes = [1, 256], strides = [1, 1]} : vector<9x256xf32> to vector<1x256xf32>
    %13 = vector.broadcast %12 : vector<1x256xf32> to vector<4x256xf32>
    %14 = arith.mulf %11, %13 : vector<4x256xf32>
    %c1_i32 = arith.constant 1 : i32
    %15 = tpu.dynamic_rotate %2 by %c1_i32 dim 1 : vector<4x256xf32>, i32 -> vector<4x256xf32>
    %16 = vector.extract_strided_slice %1 {offsets = [3, 0], sizes = [1, 256], strides = [1, 1]} : vector<9x256xf32> to vector<1x256xf32>
    %17 = vector.broadcast %16 : vector<1x256xf32> to vector<4x256xf32>
    %18 = arith.mulf %15, %17 : vector<4x256xf32>
    %c255_i32 = arith.constant 255 : i32
    %19 = tpu.dynamic_rotate %2 by %c255_i32 dim 1 : vector<4x256xf32>, i32 -> vector<4x256xf32>
    %20 = vector.extract_strided_slice %1 {offsets = [5, 0], sizes = [1, 256], strides = [1, 1]} : vector<9x256xf32> to vector<1x256xf32>
    %21 = vector.broadcast %20 : vector<1x256xf32> to vector<4x256xf32>
    %22 = arith.mulf %19, %21 : vector<4x256xf32>
    %c241_i32 = arith.constant 241 : i32
    %23 = tpu.dynamic_rotate %2 by %c241_i32 dim 1 : vector<4x256xf32>, i32 -> vector<4x256xf32>
    %24 = vector.extract_strided_slice %1 {offsets = [6, 0], sizes = [1, 256], strides = [1, 1]} : vector<9x256xf32> to vector<1x256xf32>
    %25 = vector.broadcast %24 : vector<1x256xf32> to vector<4x256xf32>
    %26 = arith.mulf %23, %25 : vector<4x256xf32>
    %c240_i32 = arith.constant 240 : i32
    %27 = tpu.dynamic_rotate %2 by %c240_i32 dim 1 : vector<4x256xf32>, i32 -> vector<4x256xf32>
    %28 = vector.extract_strided_slice %1 {offsets = [7, 0], sizes = [1, 256], strides = [1, 1]} : vector<9x256xf32> to vector<1x256xf32>
    %29 = vector.broadcast %28 : vector<1x256xf32> to vector<4x256xf32>
    %30 = arith.mulf %27, %29 : vector<4x256xf32>
    %c239_i32 = arith.constant 239 : i32
    %31 = tpu.dynamic_rotate %2 by %c239_i32 dim 1 : vector<4x256xf32>, i32 -> vector<4x256xf32>
    %32 = vector.extract_strided_slice %1 {offsets = [8, 0], sizes = [1, 256], strides = [1, 1]} : vector<9x256xf32> to vector<1x256xf32>
    %33 = vector.broadcast %32 : vector<1x256xf32> to vector<4x256xf32>
    %34 = arith.mulf %31, %33 : vector<4x256xf32>
    %35 = tpu.concatenate %6, %10, %14, %18, %2, %22, %26, %30, %34 in 0 : vector<4x256xf32>, vector<4x256xf32>, vector<4x256xf32>, vector<4x256xf32>, vector<4x256xf32>, vector<4x256xf32>, vector<4x256xf32>, vector<4x256xf32>, vector<4x256xf32> -> vector<36x256xf32>
    %c0_4 = arith.constant 0 : index
    %c0_5 = arith.constant 0 : index
    %36 = vector.load %arg2[%c0_4, %c0_5] : memref<16x36xf32, #tpu.memory_space<vmem>>, vector<16x36xf32>
    %cst = arith.constant dense<0.000000e+00> : vector<16x256xf32>
    %37 = tpu.matmul %36, %35, %cst {dimension_numbers = #tpu.dot_dimension_numbers<[1], [0], [0], [1], [0, 0, 1, 1], [], []>} : vector<16x36xf32>, vector<36x256xf32>, vector<16x256xf32> -> vector<16x256xf32>
    %38 = vector.extract_strided_slice %37 {offsets = [0, 0], sizes = [8, 256], strides = [1, 1]} : vector<16x256xf32> to vector<8x256xf32>
    %39 = vector.extract_strided_slice %37 {offsets = [8, 0], sizes = [8, 256], strides = [1, 1]} : vector<16x256xf32> to vector<8x256xf32>
    %40 = arith.negf %39 : vector<8x256xf32>
    %41 = math.exp %40 : vector<8x256xf32>
    %cst_6 = arith.constant 1.000000e+00 : f32
    %42 = vector.broadcast %cst_6 : f32 to vector<8x256xf32>
    %43 = arith.addf %42, %41 : vector<8x256xf32>
    %44 = arith.divf %42, %43 : vector<8x256xf32>
    %45 = arith.mulf %38, %44 : vector<8x256xf32>
    %c0_7 = arith.constant 0 : index
    %c0_8 = arith.constant 0 : index
    %c0_9 = arith.constant 0 : index
    %46 = vector.load %arg4[%c0_7, %c0_8, %c0_9] : memref<1x8x256xf32, #tpu.memory_space<vmem>>, vector<1x8x256xf32>
    %47 = vector.shape_cast %46 : vector<1x8x256xf32> to vector<8x256xf32>
    %48 = vector.shape_cast %45 : vector<8x256xf32> to vector<1x8x256xf32>
    tpu.vector_store %arg4[%c0_7, %c0_8, %c0_9], %48 {strides = array<i32>} : memref<1x8x256xf32, #tpu.memory_space<vmem>>, vector<1x8x256xf32>,
    return
  }
  func.func @transform_0(%arg0: i32) -> (i32, i32, i32) {
    %c0_i32 = arith.constant 0 : i32
    %c0_i32_0 = arith.constant 0 : i32
    %c0_i32_1 = arith.constant 0 : i32
    return %arg0, %c0_i32, %c0_i32_0 : i32, i32, i32
  }
  func.func @transform_1(%arg0: i32) -> (i32, i32) {
    %c0_i32 = arith.constant 0 : i32
    %c0_i32_0 = arith.constant 0 : i32
    %c0_i32_1 = arith.constant 0 : i32
    return %c0_i32, %c0_i32_0 : i32, i32
  }
  func.func @transform_2(%arg0: i32) -> (i32, i32) {
    %c0_i32 = arith.constant 0 : i32
    %c0_i32_0 = arith.constant 0 : i32
    %c0_i32_1 = arith.constant 0 : i32
    return %c0_i32, %c0_i32_0 : i32, i32
  }
  func.func @transform_3(%arg0: i32) -> (i32, i32, i32) {
    %c0_i32 = arith.constant 0 : i32
    %c0_i32_0 = arith.constant 0 : i32
    %c0_i32_1 = arith.constant 0 : i32
    return %arg0, %c0_i32, %c0_i32_0 : i32, i32, i32
  }
}

</mosaic_0001>

<bundles_post_ra>
// kernel: tpu_custom_call.1
= control target key start
LH: loop header
LB: loop body
LE: loop exit
PB: predicated region body
PF: predicated region fallthrough
CT: control target
= control target key end

     0   :  { %8 = vsyncpa [#allocation3], 0  ;;  %s1244_s0 = inlined_call_operand.hbm [shape: f32[2,4,256], index: 0, kind: input, shape index: {}]   ;;  %s1245_s1 = inlined_call_operand.hbm [shape: f32[16,36], index: 1, kind: input, shape index: {}]   ;;  %s1246_s2 = inlined_call_operand.hbm [shape: f32[9,256], index: 2, kind: input, shape index: {}]   ;;  %s1247_s3 = inlined_call_operand.hbm [shape: f32[2,8,256], index: 3, kind: output, shape index: {}]  }
   0x1   :  { %10 = vsyncpa [#allocation3 + $0x1], 0 }
   0x2   :  { %11 = vsyncpa [#allocation6], 0 }
   0x3   :  { %12 = vsyncpa [#allocation4], 0 }
   0x4   :  { %14 = vsyncpa [#allocation4 + $0x1], 0  ;;  %s933_s12 = smov 0   ;;  %s935_s13 = smov 0  }
   0x5   :  { %s937_s14 = smov 0   ;;  %s939_s15 = smov 0  }
   0x6 LB: > { %s954_s16 = sadd.s32 4294967295, %s894_s15   ;;  %s607_s17 = sadd.s32 4294967294, %s894_s15   ;;  %s894_s15 = sphi %s939_s15, %s1267_s15   ;;  %s890_s14 = sphi %s937_s14, %s1266_s14   ;;  %s886_s13 = sphi %s935_s13, %s1265_s13   ;;  %s882_s12 = sphi %s933_s12, %s1264_s12  }
   0x7   : > { %p40_p0 = scmp.ne.s32.totalorder %s886_s13, %s882_s12  ;;  %p1248_p1 = scmp.eq.s32.totalorder %s954_s16, 0 }
   0x8   : > { %p112_p3 = scmp.eq.s32.totalorder %s607_s17, 1  ;;  %p608_p5 = scmp.ge.s32.totalorder %s894_s15, 1 }
   0x9   : > { %p963_p4 = por %p1248_p1, %p40_p0  ;;  %p119_p7 = scmp.lt.s32.totalorder %s894_s15, 3 }
   0xa   : > { %p968_p6 = por %p112_p3, %p40_p0  ;;  %s896_s21 = smov [#allocation5]  }
   0xb   : > { %s1251_s18 = scalar_select %p963_p4, 1, 0 }
   0xc   : > { %s1252_s19 = scalar_select %p968_p6, 1, 0 }
   0xd   : > { %p973_p8 = pnand %p608_p5, %p119_p7  ;;  %s131_s22 = sshll.u32 %s896_s21, 4  ;;  %s977_s22 = int_to_ptr.vmem [resolvable:$true] %s131_s22 }
   0xe   : > { %s897_s24 = smov [#allocation7]   ;;  %s738_s28 = scalar_lea.hbm %s1245_s1, 256 }
   0xf   : > { %p661_p9 = pneg %p973_p8  ;;  %s144_s25 = sshll.u32 %s897_s24, 4  ;;  %s988_s25 = int_to_ptr.vmem [resolvable:$true] %s144_s25 }
  0x10   : > { %p739_p12 = scmp.ne.s32.totalorder %s1245_s1, %s738_s28  ;;  %p745_p5 = scmp.lt.u32.totalorder %s738_s28, %s1245_s1 }
  0x11   : > { %p984_p11 = pnand %p661_p9, %p1248_p1 }
  0x13   : > { %p740_p13 = pneg %p984_p11 }
  0x15   : > { %p741_p0 = pnand %p740_p13, %p739_p12 }
  0x17   : > { %p742_p3 = pneg %p741_p0 }
  0x19   : > { %p747_p7 = pnand %p745_p5, %p742_p3 }
  0x1b   : > { %750 = shalt.err (!%p747_p7)
}
  0x1c   : > { %s751_s6 = scalar_lea.vmem %s977_s22, 256  ;;  %p759_p2 = scmp.lt.s32.totalorder %s977_s22, %s977_s22 }
  0x1d   : > { %p752_p9 = scmp.ne.s32.totalorder %s977_s22, %s751_s6  ;;  %p760_p12 = scmp.lt.s32.totalorder %s751_s6, %s751_s6 }
  0x1f   : > { %p754_p10 = pnand %p752_p9, %p740_p13  ;;  %p761_p0 = por %p760_p12, %p759_p2 }
  0x21   : > { %p755_p1 = pneg %p754_p10 }
  0x23   : > { %p762_p6 = pnand %p761_p0, %p755_p1 }
  0x25   : > { %765 = shalt.err (!%p762_p6)
}
  0x26   : > { %s898_s7 = smov 128   ;;  %s899_s8 = smov 8  }
  0x27   : > { %664 = dma.hbm_to_vmem [thread:$0]  (!%p984_p11), %s1245_s1, 256, %s977_s22, [#allocation6], %s898_s7, %s898_s7, %s899_s8  }
  0x28   : > { %s766_s21 = scalar_lea.hbm %s1246_s2, 512 }
  0x29   : > { %p767_p2 = scmp.ne.s32.totalorder %s1246_s2, %s766_s21  ;;  %p773_p10 = scmp.lt.u32.totalorder %s766_s21, %s1246_s2 }
  0x2b   : > { %p769_p1 = pnand %p767_p2, %p740_p13 }
  0x2d   : > { %p770_p6 = pneg %p769_p1 }
  0x2f   : > { %p775_p3 = pnand %p773_p10, %p770_p6 }
  0x31   : > { %778 = shalt.err (!%p775_p3)
}
  0x32   : > { %s779_s22 = scalar_lea.vmem %s988_s25, 512  ;;  %p787_p12 = scmp.lt.s32.totalorder %s988_s25, %s988_s25 }
  0x33   : > { %p780_p5 = scmp.ne.s32.totalorder %s988_s25, %s779_s22  ;;  %p788_p0 = scmp.lt.s32.totalorder %s779_s22, %s779_s22 }
  0x35   : > { %p782_p7 = pnand %p780_p5, %p740_p13  ;;  %p789_p2 = por %p788_p0, %p787_p12 }
  0x37   : > { %p783_p9 = pneg %p782_p7 }
  0x39   : > { %p790_p1 = pnand %p789_p2, %p783_p9 }
  0x3b   : > { %793 = shalt.err (!%p790_p1)
}
  0x3c   : > { %s900_s29 = smov 256   ;;  %s901_s30 = smov 16  }
  0x3d   : > { %667 = dma.hbm_to_vmem [thread:$0]  (!%p984_p11), %s1246_s2, 512, %s988_s25, [#allocation6], %s900_s29, %s900_s29, %s901_s30  }
  0x3e   : > { %s1043_s6 = sadd.s32 1, %s894_s15   ;;  %s27_s8 = sadd.s32 1, %s890_s14 }
  0x3f   : > { %s24_s7 = ssub.s32 %s894_s15, %s1043_s6  ;;  %p34_p6 = scmp.ne.s32.totalorder %s890_s14, %s886_s13 }
  0x40   : > { %p25_p13 = scmp.eq.s32.totalorder %s24_s7, 0  ;;  %p35_p10 = scmp.eq.s32.totalorder %s894_s15, 0 }
  0x41   : > { %p1255_p5 = scmp.eq.s32.totalorder %s954_s16, 1  ;;  %p678_p9 = scmp.lt.s32.totalorder %s894_s15, 2 }
  0x42   : > { %s1052_s9 = scalar_select %p25_p13, %s890_s14, %s27_s8  }
  0x43   : > { %p36_p3 = por %p35_p10, %p34_p6  ;;  %p1056_p7 = por %p1255_p5, %p34_p6 }
  0x44   : > { %s158_s23 = sand.u32 1, %s890_s14   ;;  %s633_s25 = sshll.u32 %s894_s15, 7 }
  0x45   : > { %s1256_s10 = scalar_select %p1056_p7, 1, 0 }
  0x46   : > { %s612_s11 = sshll.u32 %s158_s23, 3  ;;  %s1066_s24 = scalar_lea.hbm %s1244_s0, %s633_s25 }
  0x47   : > { %s162_s26 = scalar_lea.vmem [#allocation2], %s612_s11  ;;  %p1070_p11 = pnand %p678_p9, %p36_p3 }
  0x48   : > { %s170_s27 = sshll.u32 %s162_s26, 4  ;;  %s159_s22 = scalar_lea.sflag [#allocation3], %s158_s23  ;;  %s1068_s27 = int_to_ptr.vmem [resolvable:$true] %s170_s27 }
  0x49   : > { %s794_s29 = scalar_lea.hbm %s1066_s24, 128  ;;  %p796_p0 = pneg %p1070_p11 }
  0x4a   : > { %p795_p12 = scmp.ne.s32.totalorder %s1066_s24, %s794_s29  ;;  %s799_s5 = scalar_lea.hbm %s1244_s0, 256 }
  0x4b   : > { %p800_p13 = scmp.lt.u32.totalorder %s1066_s24, %s1244_s0  ;;  %p801_p6 = scmp.lt.u32.totalorder %s799_s5, %s794_s29 }
  0x4c   : > { %p797_p2 = pnand %p796_p0, %p795_p12  ;;  %p803_p3 = scmp.lt.u32.totalorder %s794_s29, %s1066_s24 }
  0x4d   : > { %p802_p10 = por %p801_p6, %p800_p13 }
  0x4e   : > { %p798_p1 = pneg %p797_p2 }
  0x4f   : > { %p804_p5 = por %p803_p3, %p802_p10 }
  0x51   : > { %p805_p9 = pnand %p804_p5, %p798_p1 }
  0x53   : > { %808 = shalt.err (!%p805_p9)
}
  0x54   : > { %s809_s23 = scalar_lea.vmem %s1068_s27, 128  ;;  %s902_s11 = smov [#allocation2]  }
  0x55   : > { %p810_p12 = scmp.ne.s32.totalorder %s1068_s27, %s809_s23  ;;  %s814_s25 = sshll.u32 %s902_s11, 4  ;;  %s815_s25 = int_to_ptr.vmem [resolvable:$false] %s814_s25 }
  0x56   : > { %s816_s17 = scalar_lea.vmem %s815_s25, 256  ;;  %p817_p4 = scmp.lt.s32.totalorder %s1068_s27, %s815_s25 }
  0x57   : > { %p812_p2 = pnand %p810_p12, %p796_p0  ;;  %p818_p13 = scmp.lt.s32.totalorder %s816_s17, %s809_s23 }
  0x59   : > { %p813_p7 = pneg %p812_p2  ;;  %p819_p6 = por %p818_p13, %p817_p4 }
  0x5b   : > { %p820_p10 = pnand %p819_p6, %p813_p7 }
  0x5d   : > { %823 = shalt.err (!%p820_p10)
}
  0x5e   : > { %671 = dma.hbm_to_vmem [thread:$0]  (!%p1070_p11), %s1066_s24, 128, %s1068_s27, %s159_s22  }
  0x5f   : > { %179 = sbr.rel (%p973_p8) target bundleno = 513 (0x201), region = 32  ;;  %s1102_s21 = sand.u32 (!%p973_p8), 1, %s886_s13  }
  0x60   : > { %s616_s26 = sshll.u32 (!%p973_p8), %s1102_s21, 3  ;;  %s182_s29 = scalar_lea.sflag (!%p973_p8), [#allocation3], %s1102_s21 }
  0x61   : > { %s185_s30 = scalar_lea.vmem (!%p973_p8), [#allocation2], %s616_s26  ;;  %p1258_p4 = scmp.ne.s32.totalorder (!%p973_p8), %s1251_s18, 0 }
  0x66   : > { %869 = dma.done.wait (%p1258_p4), %s182_s29, 128  }
  0x67   : > { %871 = vsyncadd (%p1258_p4), %s182_s29, 4294967168  ;;  %p1259_p7 = scmp.eq.s32.totalorder %s954_s16, 0 }
  0x69   : > { %873 = dma.done.wait (%p1259_p7), [#allocation6], 768   ;;  %p1260_p11 = pmov %p1259_p7 }
  0x6a   : > { %v1114_v0 = vld [vmem:[%s185_s30] sm:$0xff]  ;;  %s903_s20 = smov 1   ;;  %s904_s24 = smov 16   ;;  %v909_v2 = vmov 0.0   ;;  %v228_v3 = vlaneseq  ;;  %vm386_vm4 = vcmask 1043456   ;;  %vm397_vm9 = vcmask 293888  }
  0x6b   : > { %875 = vsyncadd (%p1260_p11), [#allocation6], 4294966528  ;;  %277 = vrot.lane.b32.xlu1 %v1114_v0, %s903_s20  ;;  %243 = vrot.lane.b32.xlu0 %v1114_v0, %s904_s24  ;;  %v1120_v1 = vcombine.high %v1114_v0, %v1114_v0  ;;  %s905_s18 = smov 17   ;;  %s906_s27 = smov 15   ;;  %v1141_v9 = vld [vmem:[#allocation7] sm:$0xff]  ;;  %v1143_v10 = vld [vmem:[#allocation7 + $0x8] sm:$0xff] }
  0x6c   : > { %s907_s28 = smov 127   ;;  %s908_s22 = smov 112   ;;  %480 = vmatprep.mubr.f32.mxu1 %v909_v2  ;;  %474 = vmatprep.mubr.f32.mxu0 %v909_v2  ;;  %v1136_v4 = vshrl.u32 %v228_v3, 7  ;;  %v1138_v5 = vand.u32 127, %v228_v3 }
  0x6d   : > { %s910_s4 = smov 113   ;;  %s911_s5 = smov 111  }
  0x6e   : > { %v286_v8 = vsub.s32 3, %v1136_v4  ;;  %v252_v11 = vsub.s32 1, %v1136_v4  ;;  %vm281_vm0 = vcmp.lt.s32.totalorder %v1138_v5, 1  ;;  %v235_v14 = vsub.s32 0, %v1136_v4  ;;  %s619_s7 = sshll.u32 %s1102_s21, 4  ;;  %s634_s8 = sshll.u32 %s954_s16, 8 }
  0x6f   : > { %224 = vrot.lane.b32.xlu0 %v1114_v0, %s905_s18  ;;  %279 = vrot.lane.b32.xlu1 %v1120_v1, %s903_s20  ;;  %vm247_vm1 = vcmp.lt.s32.totalorder %v1138_v5, 16  ;;  %v269_v17 = vsub.s32 2, %v1136_v4  ;;  %vm230_vm2 = vcmp.lt.s32.totalorder %v1138_v5, 17  ;;  %vm264_vm3 = vcmp.lt.s32.totalorder %v1138_v5, 15  ;;  %s215_s23 = scalar_lea.vmem [#allocation8], %s619_s7  ;;  %s1200_s26 = scalar_lea.hbm %s1247_s3, %s634_s8 }
  0x70   : > { %v287_v15 = vrot.slane %v1141_v9, %v286_v8  ;;  %v291_v16 = vrot.slane %v1143_v10, %v286_v8  ;;  %v253_v20 = vrot.slane %v1141_v9, %v252_v11  ;;  %v257_v21 = vrot.slane %v1143_v10, %v252_v11  ;;  %s518_s11 = sshll.u32 %s215_s23, 4  ;;  %s504_s29 = scalar_lea.sflag [#allocation4], %s1102_s21  ;;  %s1202_s11 = int_to_ptr.vmem [resolvable:$true] %s518_s11 }
  0x71   : > { %v236_v22 = vrot.slane %v1141_v9, %v235_v14  ;;  %v240_v23 = vrot.slane %v1143_v10, %v235_v14  ;;  %v270_v32 = vrot.slane %v1141_v9, %v269_v17  ;;  %v274_v33 = vrot.slane %v1143_v10, %v269_v17  ;;  %s824_s16 = scalar_lea.vmem %s1202_s11, 256  ;;  %p1261_p0 = scmp.ne.s32.totalorder %s1256_s10, 0 }
  0x72   : > { %v303_v36 = vsub.s32 5, %v1136_v4  ;;  %vm298_vm5 = vcmp.lt.s32.totalorder %v1138_v5, 127  ;;  %v337_v41 = vsub.s32 7, %v1136_v4  ;;  %vm332_vm6 = vcmp.lt.s32.totalorder %v1138_v5, 112  ;;  %p825_p8 = scmp.ne.s32.totalorder %s1202_s11, %s824_s16  ;;  %s912_s30 = smov [#allocation8]  }
  0x73   : > { %226 = vrot.lane.b32.xlu1 %v1120_v1, %s905_s18  ;;  %245 = vrot.lane.b32.xlu0 %v1120_v1, %s904_s24  ;;  %v320_v2 = vsub.s32 6, %v1136_v4  ;;  %vm315_vm7 = vcmp.lt.s32.totalorder %v1138_v5, 113  ;;  %vm349_vm8 = vcmp.lt.s32.totalorder %v1138_v5, 111  ;;  %s828_s20 = sshll.u32 %s912_s30, 4  ;;  %s829_s20 = int_to_ptr.vmem [resolvable:$false] %s828_s20 }
  0x74   : > { %v304_v50 = vrot.slane %v1141_v9, %v303_v36  ;;  %v308_v51 = vrot.slane %v1143_v10, %v303_v36  ;;  %v338_v62 = vrot.slane %v1141_v9, %v337_v41  ;;  %v342_v63 = vrot.slane %v1143_v10, %v337_v41  ;;  %p826_p1 = pnand %p825_p8, %p1261_p0  ;;  %s830_s24 = scalar_lea.vmem %s829_s20, 512 }
  0x75   : > { %p831_p5 = scmp.lt.s32.totalorder %s1202_s11, %s829_s20  ;;  %p832_p9 = scmp.lt.s32.totalorder %s830_s24, %s824_s16 }
  0x76   : > { %p827_p3 = pneg %p826_p1 }
  0x77   : > { %262 = vrot.lane.b32.xlu1 %v1120_v1, %s906_s27  ;;  %260 = vrot.lane.b32.xlu0 %v1114_v0, %s906_s27  ;;  %p833_p12 = por %p832_p9, %p831_p5 }
  0x79   : > { %p834_p2 = pnand %p833_p12, %p827_p3 }
  0x7b   : > { %296 = vrot.lane.b32.xlu1 %v1120_v1, %s907_s28  ;;  %294 = vrot.lane.b32.xlu0 %v1114_v0, %s907_s28 }
  0x7f   : > { %330 = vrot.lane.b32.xlu1 %v1120_v1, %s908_s22  ;;  %328 = vrot.lane.b32.xlu0 %v1114_v0, %s908_s22 }
  0x83   : > { %313 = vrot.lane.b32.xlu1 %v1120_v1, %s910_s4  ;;  %311 = vrot.lane.b32.xlu0 %v1114_v0, %s910_s4 }
  0x87   : > { %347 = vrot.lane.b32.xlu1 %v1120_v1, %s911_s5  ;;  %345 = vrot.lane.b32.xlu0 %v1114_v0, %s911_s5 }
  0xdd   : > { %v278_v6 = vpop.permute.xlu1 %277  ;;  %v244_v7 = vpop.permute.xlu0 %243 }
  0xe1   : > { %v225_v12 = vpop.permute.xlu0 %224  ;;  %v280_v13 = vpop.permute.xlu1 %279 }
  0xe2   : > { %v282_v18 = vsel %vm281_vm0, %v278_v6, %v280_v13  ;;  %v283_v19 = vsel %vm281_vm0, %v280_v13, %v278_v6 }
  0xe3   : > { %v292_v26 = vmul.f32 %v287_v15, %v283_v19  ;;  %v293_v27 = vmul.f32 %v291_v16, %v282_v18  ;;  %v321_v15 = vrot.slane %v1141_v9, %v320_v2  ;;  %v325_v16 = vrot.slane %v1143_v10, %v320_v2 }
  0xe5   : > { %v227_v24 = vpop.permute.xlu1 %226  ;;  %v246_v25 = vpop.permute.xlu0 %245  ;;  %v370_v42 = vrot.slane %v292_v26, 4  ;;  %v371_v43 = vrot.slane %v293_v27, 4  ;;  %v621_v26 = vld [vmem:[#allocation7 + $0x18] ss:$0 sm:$0xff] }
  0xe6   : > { %v248_v28 = vsel %vm247_vm1, %v244_v7, %v246_v25  ;;  %v249_v29 = vsel %vm247_vm1, %v246_v25, %v244_v7  ;;  %v231_v34 = vsel %vm230_vm2, %v225_v12, %v227_v24  ;;  %v232_v35 = vsel %vm230_vm2, %v227_v24, %v225_v12 }
  0xe7   : > { %v258_v30 = vmul.f32 %v253_v20, %v249_v29  ;;  %v259_v31 = vmul.f32 %v257_v21, %v248_v28  ;;  %v241_v46 = vmul.f32 %v236_v22, %v232_v35  ;;  %v242_v47 = vmul.f32 %v240_v23, %v231_v34 }
  0xe9   : > { %v364_v37 = vrot.slane %v258_v30, 4  ;;  %v365_v38 = vrot.slane %v259_v31, 4  ;;  %v263_v39 = vpop.permute.xlu1 %262  ;;  %v261_v40 = vpop.permute.xlu0 %260 }
  0xea   : > { %v265_v44 = vsel %vm264_vm3, %v261_v40, %v263_v39  ;;  %v266_v45 = vsel %vm264_vm3, %v263_v39, %v261_v40 }
  0xeb   : > { %v275_v48 = vmul.f32 %v270_v32, %v266_v45  ;;  %v276_v49 = vmul.f32 %v274_v33, %v265_v44  ;;  %v388_v54 = vsel %vm386_vm4, %v242_v47, %v365_v38  ;;  %v387_v56 = vsel %vm386_vm4, %v241_v46, %v364_v37  ;;  %v620_v32 = vld [vmem:[#allocation7 + $0x10] ss:$0 sm:$0xff] }
  0xed   : > { %v297_v52 = vpop.permute.xlu1 %296  ;;  %v295_v53 = vpop.permute.xlu0 %294  ;;  %v390_v55 = vsel %vm386_vm4, %v276_v49, %v371_v43  ;;  %v389_v57 = vsel %vm386_vm4, %v275_v48, %v370_v42 }
  0xee   : > { %v299_v58 = vsel %vm298_vm5, %v295_v53, %v297_v52  ;;  %v300_v59 = vsel %vm298_vm5, %v297_v52, %v295_v53  ;;  %v635_v60 = vpack.c.bf16 %v390_v55, %v388_v54  ;;  %v637_v61 = vpack.c.bf16 %v389_v57, %v387_v56 }
  0xef   : > { %v309_v3 = vmul.f32 %v304_v50, %v299_v58  ;;  %v310_v6 = vmul.f32 %v308_v51, %v300_v59 }
  0xf0   : > { %636 = vmatprep.subr.bf16.mxu0 %v635_v60  ;;  %643 = vmatprep.subr.bf16.mxu1 %v635_v60 }
  0xf1   : > { %v331_v7 = vpop.permute.xlu1 %330  ;;  %638 = vmatpush1.bf16.msra.mxu0 %v637_v61  ;;  %646 = vmatpush1.bf16.msra.mxu1 %v637_v61  ;;  %v329_v8 = vpop.permute.xlu0 %328  ;;  %v376_v17 = vrot.slane %v309_v3, 4  ;;  %v377_v4 = vrot.slane %v310_v6, 4 }
  0xf2   : > { %v333_v11 = vsel %vm332_vm6, %v329_v8, %v331_v7  ;;  %v334_v12 = vsel %vm332_vm6, %v331_v7, %v329_v8 }
  0xf3   : > { %v343_v13 = vmul.f32 %v338_v62, %v333_v11  ;;  %v344_v14 = vmul.f32 %v342_v63, %v334_v12  ;;  %v392_v28 = vsel %vm386_vm4, %v1120_v1, %v377_v4  ;;  %v391_v29 = vsel %vm386_vm4, %v1114_v0, %v376_v17  ;;  %v396_v1 = vld [vmem:[#allocation5 + $0x8] sm:$0xff]  ;;  %v395_v0 = vld [vmem:[#allocation5] sm:$0xff] }
  0xf5   : > { %v314_v18 = vpop.permute.xlu1 %313  ;;  %v312_v19 = vpop.permute.xlu0 %311  ;;  %v382_v22 = vrot.slane %v343_v13, 4  ;;  %v383_v23 = vrot.slane %v344_v14, 4 }
  0xf6   : > { %v316_v20 = vsel %vm315_vm7, %v312_v19, %v314_v18  ;;  %v317_v21 = vsel %vm315_vm7, %v314_v18, %v312_v19 }
  0xf7   : > { %v326_v24 = vmul.f32 %v321_v15, %v316_v20  ;;  %v327_v25 = vmul.f32 %v325_v16, %v317_v21 }
  0xf9   : > { %v348_v27 = vpop.permute.xlu1 %347  ;;  %v394_v9 = vsel %vm386_vm4, %v327_v25, %v383_v23  ;;  %v346_v10 = vpop.permute.xlu0 %345  ;;  %v393_v30 = vsel %vm386_vm4, %v326_v24, %v382_v22 }
  0xfa   : > { %v639_v31 = vpack.c.bf16 %v394_v9, %v392_v28  ;;  %v350_v5 = vsel %vm349_vm8, %v346_v10, %v348_v27  ;;  %v351_v33 = vsel %vm349_vm8, %v348_v27, %v346_v10  ;;  %v641_v34 = vpack.c.bf16 %v393_v30, %v391_v29 }
  0xfb   : > { %v361_v35 = vmul.f32 %v621_v26, %v351_v33  ;;  %v360_v36 = vmul.f32 %v620_v32, %v350_v5 }
  0xfc   : > { %640 = vmatprep.subr.bf16.mxu0 %v639_v31  ;;  %644 = vmatprep.subr.bf16.mxu1 %v639_v31 }
  0xfd   : > { %642 = vmatpush1.bf16.msra.mxu0 %v641_v34  ;;  %647 = vmatpush1.bf16.msra.mxu1 %v641_v34 }
  0xfe   : > { %622 = vmatprep.subr.msk.mxu0 %vm386_vm4, %v361_v35  ;;  %645 = vmatprep.subr.msk.mxu1 %vm386_vm4, %v361_v35 }
 0x101   : > { %623 = vmatpush1.msk.msra.mxu0 %vm386_vm4, %v360_v36  ;;  %648 = vmatpush1.msk.msra.mxu1 %vm386_vm4, %v360_v36 }
 0x102   : > { %625 = vmatmul.mubr.msk.f32.vlgmr.msra.gmra.mrb[0].mxu1 %vm397_vm9, %v396_v1  ;;  %624 = vmatmul.mubr.msk.f32.vlgmr.msra.gmra.mrb[0].mxu0 %vm397_vm9, %v395_v0 }
 0x1d5   : > { %v482_v37 = vpop.f32.mrb[0].mxu1  ;;  %v476_v38 = vpop.f32.mrb[0].mxu0 }
 0x1d6   : > { %v626_v39 = vmul.f32 -1.442695, %v482_v37  ;;  %v484_v40 = vpop.f32.mrb[1].mxu1  ;;  %v478_v41 = vpop.f32.mrb[1].mxu0 }
 0x1d7   : > { %v627_v42 = vmul.f32 -1.442695, %v484_v40 }
 0x1d8   : > { %730 = vpow2.f32 %v626_v39 }
 0x1d9   : > { %732 = vpow2.f32 %v627_v42 }
 0x1e2   : > { %v731_v43 = vpop.eup %730 }
 0x1e3   : > { %v733_v44 = vpop.eup %732  ;;  %v493_v45 = vadd.f32 1.0, %v731_v43 }
 0x1e4   : > { %v494_v46 = vadd.f32 1.0, %v733_v44 }
 0x1e5   : > { %734 = vrcp.f32 %v493_v45 }
 0x1e6   : > { %736 = vrcp.f32 %v494_v46 }
 0x1ef   : > { %v735_v47 = vpop.eup %734 }
 0x1f0   : > { %v737_v48 = vpop.eup %736  ;;  %v499_v49 = vmul.f32 %v735_v47, %v476_v38 }
 0x1f1   : > { %v500_v50 = vmul.f32 %v737_v48, %v478_v41 }
 0x1f2   : > { %501 = vst [vmem:[%s215_s23] sm:$0xff] %v499_v49 }
 0x1f3   : > { %502 = vst [vmem:[%s215_s23 + $0x8] sm:$0xff] %v500_v50 }
 0x1f4   : > { %837 = shalt.err (!%p834_p2)
}
 0x1f5   : > { %s838_s21 = scalar_lea.hbm %s1200_s26, 256  ;;  %s842_s28 = scalar_lea.hbm %s1247_s3, 512 }
 0x1f6   : > { %p839_p13 = scmp.ne.s32.totalorder %s1200_s26, %s838_s21  ;;  %p843_p4 = scmp.lt.u32.totalorder %s1200_s26, %s1247_s3 }
 0x1f7   : > { %p844_p7 = scmp.lt.u32.totalorder %s842_s28, %s838_s21  ;;  %p846_p8 = scmp.lt.u32.totalorder %s838_s21, %s1200_s26 }
 0x1f8   : > { %p840_p6 = pnand %p839_p13, %p1261_p0 }
 0x1f9   : > { %p845_p11 = por %p844_p7, %p843_p4 }
 0x1fa   : > { %p841_p10 = pneg %p840_p6 }
 0x1fb   : > { %p847_p1 = por %p846_p8, %p845_p11 }
 0x1fd   : > { %p848_p3 = pnand %p847_p1, %p841_p10 }
 0x1ff   : > { %851 = shalt.err (!%p848_p3)
}
 0x200   : > { %659 = dma.vmem_to_hbm [thread:$0]  (%p1261_p0), %s1202_s11, 256, %s1200_s26, %s504_s29  }
 0x201 PF: > { %s530_s5 = sand.u32 1, %s882_s12   ;;  %p1262_p5 = scmp.ne.s32.totalorder %s1252_s19, 0 }
 0x202   : > { %p1263_p9 = scmp.ge.s32.totalorder %s894_s15, 2  ;;  %s531_s7 = scalar_lea.sflag [#allocation4], %s530_s5 }
 0x204   : > { %p673_p12 = pnand %p1263_p9, %p1262_p5 }
 0x206   : > { %877 = dma.done.wait (!%p673_p12), %s531_s7, 256  }
 0x207   : > { %879 = vsyncadd (!%p673_p12), %s531_s7, 4294967040  ;;  %p17_p2 = scmp.ge.s32.totalorder %s1043_s6, 4   ;;  %s1264_s12 = smov %s886_s13 }
 0x208   : > { %s1265_s13 = smov %s890_s14  ;;  %s1266_s14 = smov %s1052_s9 }
 0x209   : > { %s1267_s15 = smov %s1043_s6  ;;  %19 = sbr.rel (!%p17_p2) target bundleno = 6 (0x6), region = 85 }
 0x210   :  { %536 = vsyncpa [#allocation3], 1 }
 0x211   :  { %538 = vsyncpa [#allocation3 + $0x1], 1 }
 0x212   :  { %539 = vsyncpa [#allocation6], 1 }
 0x213   :  { %540 = vsyncpa [#allocation4], 1 }
 0x214   :  { %542 = vsyncpa [#allocation4 + $0x1], 1 }

</bundles_post_ra>
